<compile_context>
chip_gen: v7x
topology: tpu7x:2x2x1
jax: 0.10.0
libtpu: 0.0.40
codegen_flags: <defaults>
</compile_context>

<pallas_src>
import jax
import jax.numpy as jnp
from jax.experimental import pallas as pl
from jax.experimental.pallas import tpu as pltpu


def _round_up(x, m):
    return ((x + m - 1) // m) * m


def _pick_chunking(hid_pad):
    """Largest lane-dense (multiple-of-128) chunk width <= 1024 that splits
    hid_pad into >= 2 chunks; fall back to a single full-width chunk."""
    q = hid_pad // 128
    for r in range(min(q, 8), 0, -1):
        if q % r == 0 and q // r >= 2:
            return 128 * r, q // r          # (nchunk, n_chunks)
    return hid_pad, 1


def _make_mlp_kernel(n_mid, n_chunks, nchunk, hid_pad, out_pad, L):
    """Fused-MLP kernel.  n_mid = number of hidden->hidden layers streamed from
    HBM; first/last layer weights arrive resident in VMEM via in_specs."""
    T = n_mid * n_chunks                    # total streamed weight chunks (static)

    def kernel(*refs):
        x_ref, b_ref, wf_ref, wl_ref = refs[:4]
        if n_mid:
            wmid_hbm = refs[4]              # (n_mid, C, hid_pad, nchunk) bf16, HBM
            o_ref = refs[5]                 # (Mp, out_pad) f32, VMEM
            w_buf = refs[6]                 # (3, hid_pad, nchunk) bf16 ring buffer
            sem = refs[7]                   # DMA semaphores (3,)

            def chunk_copy(g):
                m, c = divmod(g, n_chunks)
                slot = g % 3
                return pltpu.make_async_copy(
                    wmid_hbm.at[m, c], w_buf.at[slot], sem.at[slot])

            # Prime the ring: two weight-chunk DMAs in flight before any compute.
            chunk_copy(0).start()
            if T > 1:
                chunk_copy(1).start()
        else:
            o_ref = refs[4]

        # ---- Layer 0: weights already resident in VMEM (pallas prologue), so
        # its matmul hides the first streamed chunk's DMA latency.
        cur = x_ref[...].astype(jnp.bfloat16)
        y = jnp.dot(cur, wf_ref[...], preferred_element_type=jnp.float32)
        y = y + b_ref[0:1, :hid_pad]        # bias (+ folded BatchNorm shift)
        cur = jnp.maximum(y, 0.0).astype(jnp.bfloat16)   # ReLU; Dropout = identity

        # ---- Middle layers: chunk-granular streaming through the 3-slot ring.
        for m in range(n_mid):
            i = m + 1
            outs = []
            for c in range(n_chunks):
                g = m * n_chunks + c
                slot = g % 3
                # Issue DMA g+2 BEFORE waiting on g.  Its destination slot
                # ((g+2) % 3 == (g-1) % 3) was last read by chunk g-1's matmul a
                # full iteration ago, so the WAR hazard is already resolved and
                # two DMAs remain outstanding at all times.
                if g + 2 < T:
                    chunk_copy(g + 2).start()
                chunk_copy(g).wait()
                yk = jnp.dot(cur, w_buf[slot],
                             preferred_element_type=jnp.float32)
                yk = yk + b_ref[i:i + 1, c * nchunk:(c + 1) * nchunk]
                outs.append(jnp.maximum(yk, 0.0).astype(jnp.bfloat16))
            cur = outs[0] if n_chunks == 1 else jnp.concatenate(outs, axis=1)

        # ---- Last layer (VMEM weights), no BatchNorm / ReLU / Dropout.
        y = jnp.dot(cur, wl_ref[...], preferred_element_type=jnp.float32)
        y = y + b_ref[L - 1:L, :out_pad]
        o_ref[...] = y.astype(o_ref.dtype)  # lane-dense (padded) output store

    return kernel


def build_classifier03(key, input_dim=429, output_dim=39, hidden_layers=5,
                       hidden_dim=2048, eps=1e-5):
    """Deterministic synthetic parameters matching Classifier03's shapes, with
    eval-mode BatchNorm folded into the Linear weights/bias, padded to lane-dense
    multiples of 128, and weights cast to bf16 for streaming."""
    dims = [input_dim] + [hidden_dim] * (hidden_layers + 1) + [output_dim]
    L = len(dims) - 1
    padded = [_round_up(d, 128) for d in dims]
    nmax = max(padded[1:])

    weights, biases = [], []
    for i in range(L):
        in_d, out_d = dims[i], dims[i + 1]
        key, k1, k2 = jax.random.split(key, 3)
        w = jax.random.normal(k1, (in_d, out_d), jnp.float32) / jnp.sqrt(float(in_d))
        b = 0.1 * jax.random.normal(k2, (out_d,), jnp.float32)
        if i < L - 1:
            # BasicBlock03: fold BatchNorm1d (eval, running stats) into W and b.
            key, k3, k4, k5, k6 = jax.random.split(key, 5)
            gamma = 1.0 + 0.1 * jax.random.normal(k3, (out_d,), jnp.float32)
            beta = 0.1 * jax.random.normal(k4, (out_d,), jnp.float32)
            r_mean = 0.1 * jax.random.normal(k5, (out_d,), jnp.float32)
            r_var = jnp.abs(jax.random.normal(k6, (out_d,), jnp.float32)) + 0.5
            scale = gamma / jnp.sqrt(r_var + eps)
            w = w * scale[None, :]
            b = (b - r_mean) * scale + beta
        Kp, Np = padded[i], padded[i + 1]
        w_p = (jnp.zeros((Kp, Np), jnp.float32)
               .at[:in_d, :out_d].set(w).astype(jnp.bfloat16))
        b_p = jnp.zeros((nmax,), jnp.float32).at[:out_d].set(b)
        weights.append(w_p)
        biases.append(b_p)

    return dict(weights=weights, biases=jnp.stack(biases, 0),
                dims=dims, padded=padded)


def pack_weights(params):
    """Split per-layer weights into (first, stacked-chunked-middle, last).
    Middle layers are repacked to (n_mid, C, K, nchunk) so every streamed chunk
    is a contiguous HBM block (no strided DMA)."""
    dims, padded = params["dims"], params["padded"]
    L = len(dims) - 1
    hid_pad = padded[1]
    nchunk, n_chunks = _pick_chunking(hid_pad)
    w = params["weights"]
    w_first, w_last = w[0], w[L - 1]
    n_mid = L - 2
    if n_mid > 0:
        mids = [wi.reshape(hid_pad, n_chunks, nchunk).transpose(1, 0, 2)
                for wi in w[1:L - 1]]
        w_mid = jnp.stack(mids, axis=0)
    else:
        w_mid = jnp.zeros((0, 1, hid_pad, nchunk), jnp.bfloat16)  # unused
    return w_first, w_mid, w_last


def make_forward(dims, padded):
    """Build a jit'd forward pass bound to this (static) layer configuration."""
    L = len(dims) - 1
    assert L >= 2
    in_pad, hid_pad, out_pad = padded[0], padded[1], padded[L]
    nmax = max(padded[1:])
    n_mid = L - 2
    nchunk, n_chunks = _pick_chunking(hid_pad)
    kernel = _make_mlp_kernel(n_mid, n_chunks, nchunk, hid_pad, out_pad, L)

    # Per-generation physical VMEM budget (64 MiB on v7x, 128 MiB on v5e/v6e).
    try:
        phys_vmem = int(pltpu.get_tpu_info().vmem_capacity_bytes)
    except Exception:
        phys_vmem = 64 * 1024 * 1024        # safe floor for all generations

    @jax.jit
    def forward(x, w_first, w_mid, w_last, biases):
        M, in_dim = x.shape
        # bf16 packs 16 sublanes per vreg -> round batch to 16 (not 8) to avoid
        # half-packed tiles / sublane relayout on every layer.
        Mp = _round_up(max(M, 16), 16)
        xp = (jnp.zeros((Mp, in_pad), jnp.float32)
              .at[:M, :in_dim].set(x.astype(jnp.float32)))

        w_bytes = (in_pad * hid_pad + n_mid * hid_pad * hid_pad
                   + hid_pad * out_pad) * 2
        flops = 2 * Mp * (in_pad * hid_pad + n_mid * hid_pad * hid_pad
                          + hid_pad * out_pad)
        bytes_accessed = (w_bytes + Mp * in_pad * 4 + Mp * out_pad * 4
                          + L * nmax * 4)

        vmem_need = (Mp * in_pad * 4             # x
                     + L * nmax * 4              # biases
                     + in_pad * hid_pad * 2      # first-layer weights (VMEM)
                     + hid_pad * out_pad * 2     # last-layer weights (VMEM)
                     + Mp * out_pad * 4          # output
                     + 3 * hid_pad * nchunk * 2  # streaming ring buffer
                     + 8 * Mp * nmax * 4)        # live activations / temps
        vmem_limit = int(min(max(32 * 1024 * 1024, vmem_need + (8 << 20)),
                             phys_vmem))

        in_specs = [pl.BlockSpec(memory_space=pltpu.MemorySpace.VMEM),   # x
                    pl.BlockSpec(memory_space=pltpu.MemorySpace.VMEM),   # biases
                    pl.BlockSpec(memory_space=pltpu.MemorySpace.VMEM),   # w_first
                    pl.BlockSpec(memory_space=pltpu.MemorySpace.VMEM)]   # w_last
        args = [xp, biases, w_first, w_last]
        scratch_shapes = []
        if n_mid > 0:
            in_specs.append(pl.BlockSpec(memory_space=pl.ANY))           # w_mid HBM
            args.append(w_mid)
            scratch_shapes = [pltpu.VMEM((3, hid_pad, nchunk), jnp.bfloat16),
                              pltpu.SemaphoreType.DMA((3,))]

        out = pl.pallas_call(
            kernel,
            out_shape=jax.ShapeDtypeStruct((Mp, out_pad), jnp.float32),
            in_specs=in_specs,
            out_specs=pl.BlockSpec(memory_space=pltpu.MemorySpace.VMEM),
            scratch_shapes=scratch_shapes,
            compiler_params=pltpu.CompilerParams(vmem_limit_bytes=vmem_limit),
            cost_estimate=pl.CostEstimate(flops=flops, transcendentals=0,
                                          bytes_accessed=bytes_accessed),
        )(*args)
        return out[:M, :dims[-1]]

    return forward


def classifier03_reference(x, params):
    """Pure-JAX reference using the same folded/padded bf16 parameters."""
    dims, padded = params["dims"], params["padded"]
    L = len(dims) - 1
    M = x.shape[0]
    h = jnp.zeros((M, padded[0]), jnp.float32).at[:, :dims[0]].set(x)
    for i in range(L):
        w = params["weights"][i]
        b = params["biases"][i, :padded[i + 1]]
        y = jnp.dot(h.astype(jnp.bfloat16), w,
                    preferred_element_type=jnp.float32) + b
        if i + 1 < L:
            y = jnp.maximum(y, 0.0)
        h = y
    return h[:, :dims[-1]]


if __name__ == "__main__":
    # Small shapes consistent with the module (defaults: 429 -> 2048 x 6 -> 39).
    BATCH, INPUT_DIM, OUTPUT_DIM, HIDDEN_LAYERS, HIDDEN_DIM = 16, 429, 39, 2, 256

    key = jax.random.PRNGKey(0)
    key, kx = jax.random.split(key)
    x = jax.random.normal(kx, (BATCH, INPUT_DIM), jnp.float32)

    params = build_classifier03(key, INPUT_DIM, OUTPUT_DIM, HIDDEN_LAYERS, HIDDEN_DIM)
    w_first, w_mid, w_last = pack_weights(params)
    forward = make_forward(params["dims"], params["padded"])

    out = jax.block_until_ready(
        forward(x, w_first, w_mid, w_last, params["biases"]))
    ref = classifier03_reference(x, params)

    assert out.shape == (BATCH, OUTPUT_DIM), out.shape
    assert jnp.allclose(out, ref, atol=1e-3, rtol=1e-3), float(
        jnp.max(jnp.abs(out - ref)))

    print("KERNEL_OK")
</pallas_src>

<mosaic_0001>
module attributes {stable_mosaic.version = 11 : i64} {
  func.func @kernel(%arg0: memref<16x512xf32, #tpu.memory_space<vmem>>, %arg1: memref<4x256xf32, #tpu.memory_space<vmem>>, %arg2: memref<512x256xbf16, #tpu.memory_space<vmem>>, %arg3: memref<256x128xbf16, #tpu.memory_space<vmem>>, %arg4: memref<2x2x256x128xbf16, #tpu.memory_space<any>>, %arg5: memref<16x128xf32, #tpu.memory_space<vmem>>, %arg6: memref<3x256x128xbf16, #tpu.memory_space<vmem>>, %arg7: memref<3x!tpu.dma_semaphore, #tpu.memory_space<semaphore_mem>>) attributes {dimension_semantics = [], scalar_prefetch = 0 : i64, scratch_operands = 2 : i64, tpu.core_type = #tpu.core_type<tc>} {
    %c0_i32 = arith.constant 0 : i32
    %c0_i32_0 = arith.constant 0 : i32
    %c0_i32_1 = arith.constant 0 : i32
    %c0_i32_2 = arith.constant 0 : i32
    %c0_i32_3 = arith.constant 0 : i32
    %c0_i32_4 = arith.constant 0 : i32
    %0 = tpu.memref_slice %arg4[%c0_i32, %c0_i32_0, %c0_i32_3, %c0_i32_4] : memref<2x2x256x128xbf16, #tpu.memory_space<any>> -> memref<1x1x256x128xbf16, #tpu.memory_space<any>>
    %1 = tpu.memref_squeeze %0 : memref<1x1x256x128xbf16, #tpu.memory_space<any>> -> memref<256x128xbf16, #tpu.memory_space<any>>
    %c0_i32_5 = arith.constant 0 : i32
    %c0_i32_6 = arith.constant 0 : i32
    %2 = tpu.memref_slice %arg6[%c0_i32_1, %c0_i32_5, %c0_i32_6] : memref<3x256x128xbf16, #tpu.memory_space<vmem>> -> memref<1x256x128xbf16, #tpu.memory_space<vmem>>
    %3 = tpu.memref_squeeze %2 : memref<1x256x128xbf16, #tpu.memory_space<vmem>> -> memref<256x128xbf16, #tpu.memory_space<vmem>>
    %4 = tpu.memref_slice %arg7[%c0_i32_2] : memref<3x!tpu.dma_semaphore, #tpu.memory_space<semaphore_mem>> -> memref<1x!tpu.dma_semaphore, #tpu.memory_space<semaphore_mem>>
    %5 = tpu.memref_squeeze %4 : memref<1x!tpu.dma_semaphore, #tpu.memory_space<semaphore_mem>> -> memref<!tpu.dma_semaphore, #tpu.memory_space<semaphore_mem>>
    tpu.enqueue_dma source(%1 : memref<256x128xbf16, #tpu.memory_space<any>>) target(%3 : memref<256x128xbf16, #tpu.memory_space<vmem>>) target_semaphore(%5 : memref<!tpu.dma_semaphore, #tpu.memory_space<semaphore_mem>>)
    %c0_i32_7 = arith.constant 0 : i32
    %c1_i32 = arith.constant 1 : i32
    %c1_i32_8 = arith.constant 1 : i32
    %c1_i32_9 = arith.constant 1 : i32
    %c0_i32_10 = arith.constant 0 : i32
    %c0_i32_11 = arith.constant 0 : i32
    %6 = tpu.memref_slice %arg4[%c0_i32_7, %c1_i32, %c0_i32_10, %c0_i32_11] : memref<2x2x256x128xbf16, #tpu.memory_space<any>> -> memref<1x1x256x128xbf16, #tpu.memory_space<any>>
    %7 = tpu.memref_squeeze %6 : memref<1x1x256x128xbf16, #tpu.memory_space<any>> -> memref<256x128xbf16, #tpu.memory_space<any>>
    %c0_i32_12 = arith.constant 0 : i32
    %c0_i32_13 = arith.constant 0 : i32
    %8 = tpu.memref_slice %arg6[%c1_i32_8, %c0_i32_12, %c0_i32_13] : memref<3x256x128xbf16, #tpu.memory_space<vmem>> -> memref<1x256x128xbf16, #tpu.memory_space<vmem>>
    %9 = tpu.memref_squeeze %8 : memref<1x256x128xbf16, #tpu.memory_space<vmem>> -> memref<256x128xbf16, #tpu.memory_space<vmem>>
    %10 = tpu.memref_slice %arg7[%c1_i32_9] : memref<3x!tpu.dma_semaphore, #tpu.memory_space<semaphore_mem>> -> memref<1x!tpu.dma_semaphore, #tpu.memory_space<semaphore_mem>>
    %11 = tpu.memref_squeeze %10 : memref<1x!tpu.dma_semaphore, #tpu.memory_space<semaphore_mem>> -> memref<!tpu.dma_semaphore, #tpu.memory_space<semaphore_mem>>
    tpu.enqueue_dma source(%7 : memref<256x128xbf16, #tpu.memory_space<any>>) target(%9 : memref<256x128xbf16, #tpu.memory_space<vmem>>) target_semaphore(%11 : memref<!tpu.dma_semaphore, #tpu.memory_space<semaphore_mem>>)
    %c0 = arith.constant 0 : index
    %c0_14 = arith.constant 0 : index
    %12 = vector.load %arg0[%c0, %c0_14] : memref<16x512xf32, #tpu.memory_space<vmem>>, vector<16x512xf32>
    %13 = arith.truncf %12 : vector<16x512xf32> to vector<16x512xbf16>
    %c0_15 = arith.constant 0 : index
    %c0_16 = arith.constant 0 : index
    %14 = vector.load %arg2[%c0_15, %c0_16] : memref<512x256xbf16, #tpu.memory_space<vmem>>, vector<512x256xbf16>
    %cst = arith.constant dense<0.000000e+00> : vector<16x256xf32>
    %15 = tpu.matmul %13, %14, %cst {dimension_numbers = #tpu.dot_dimension_numbers<[1], [0], [0], [1], [0, 0, 1, 1], [], []>} : vector<16x512xbf16>, vector<512x256xbf16>, vector<16x256xf32> -> vector<16x256xf32>
    %c0_17 = arith.constant 0 : index
    %c0_18 = arith.constant 0 : index
    %16 = vector.load %arg1[%c0_17, %c0_18] : memref<4x256xf32, #tpu.memory_space<vmem>>, vector<1x256xf32>
    %17 = vector.broadcast %16 : vector<1x256xf32> to vector<16x256xf32>
    %18 = arith.addf %15, %17 : vector<16x256xf32>
    %cst_19 = arith.constant 0.000000e+00 : f32
    %19 = vector.broadcast %cst_19 : f32 to vector<16x256xf32>
    %20 = arith.maximumf %18, %19 : vector<16x256xf32>
    %21 = arith.truncf %20 : vector<16x256xf32> to vector<16x256xbf16>
    %c1_i32_20 = arith.constant 1 : i32
    %c0_i32_21 = arith.constant 0 : i32
    %c2_i32 = arith.constant 2 : i32
    %c2_i32_22 = arith.constant 2 : i32
    %c0_i32_23 = arith.constant 0 : i32
    %c0_i32_24 = arith.constant 0 : i32
    %22 = tpu.memref_slice %arg4[%c1_i32_20, %c0_i32_21, %c0_i32_23, %c0_i32_24] : memref<2x2x256x128xbf16, #tpu.memory_space<any>> -> memref<1x1x256x128xbf16, #tpu.memory_space<any>>
    %23 = tpu.memref_squeeze %22 : memref<1x1x256x128xbf16, #tpu.memory_space<any>> -> memref<256x128xbf16, #tpu.memory_space<any>>
    %c0_i32_25 = arith.constant 0 : i32
    %c0_i32_26 = arith.constant 0 : i32
    %24 = tpu.memref_slice %arg6[%c2_i32, %c0_i32_25, %c0_i32_26] : memref<3x256x128xbf16, #tpu.memory_space<vmem>> -> memref<1x256x128xbf16, #tpu.memory_space<vmem>>
    %25 = tpu.memref_squeeze %24 : memref<1x256x128xbf16, #tpu.memory_space<vmem>> -> memref<256x128xbf16, #tpu.memory_space<vmem>>
    %26 = tpu.memref_slice %arg7[%c2_i32_22] : memref<3x!tpu.dma_semaphore, #tpu.memory_space<semaphore_mem>> -> memref<1x!tpu.dma_semaphore, #tpu.memory_space<semaphore_mem>>
    %27 = tpu.memref_squeeze %26 : memref<1x!tpu.dma_semaphore, #tpu.memory_space<semaphore_mem>> -> memref<!tpu.dma_semaphore, #tpu.memory_space<semaphore_mem>>
    tpu.enqueue_dma source(%23 : memref<256x128xbf16, #tpu.memory_space<any>>) target(%25 : memref<256x128xbf16, #tpu.memory_space<vmem>>) target_semaphore(%27 : memref<!tpu.dma_semaphore, #tpu.memory_space<semaphore_mem>>)
    %c0_i32_27 = arith.constant 0 : i32
    %c0_i32_28 = arith.constant 0 : i32
    %c0_i32_29 = arith.constant 0 : i32
    %c0_i32_30 = arith.constant 0 : i32
    %c0_i32_31 = arith.constant 0 : i32
    %c0_i32_32 = arith.constant 0 : i32
    %28 = tpu.memref_slice %arg4[%c0_i32_27, %c0_i32_28, %c0_i32_31, %c0_i32_32] : memref<2x2x256x128xbf16, #tpu.memory_space<any>> -> memref<1x1x256x128xbf16, #tpu.memory_space<any>>
    %29 = tpu.memref_squeeze %28 : memref<1x1x256x128xbf16, #tpu.memory_space<any>> -> memref<256x128xbf16, #tpu.memory_space<any>>
    %c0_i32_33 = arith.constant 0 : i32
    %c0_i32_34 = arith.constant 0 : i32
    %30 = tpu.memref_slice %arg6[%c0_i32_29, %c0_i32_33, %c0_i32_34] : memref<3x256x128xbf16, #tpu.memory_space<vmem>> -> memref<1x256x128xbf16, #tpu.memory_space<vmem>>
    %31 = tpu.memref_squeeze %30 : memref<1x256x128xbf16, #tpu.memory_space<vmem>> -> memref<256x128xbf16, #tpu.memory_space<vmem>>
    %32 = tpu.memref_slice %arg7[%c0_i32_30] : memref<3x!tpu.dma_semaphore, #tpu.memory_space<semaphore_mem>> -> memref<1x!tpu.dma_semaphore, #tpu.memory_space<semaphore_mem>>
    %33 = tpu.memref_squeeze %32 : memref<1x!tpu.dma_semaphore, #tpu.memory_space<semaphore_mem>> -> memref<!tpu.dma_semaphore, #tpu.memory_space<semaphore_mem>>
    tpu.wait_dma2 semaphore(%33 : memref<!tpu.dma_semaphore, #tpu.memory_space<semaphore_mem>>) src(%29 : memref<256x128xbf16, #tpu.memory_space<any>>) dst(%31 : memref<256x128xbf16, #tpu.memory_space<vmem>>)
    %c0_35 = arith.constant 0 : index
    %c0_36 = arith.constant 0 : index
    %c0_37 = arith.constant 0 : index
    %34 = vector.load %arg6[%c0_35, %c0_36, %c0_37] : memref<3x256x128xbf16, #tpu.memory_space<vmem>>, vector<1x256x128xbf16>
    %35 = vector.shape_cast %34 : vector<1x256x128xbf16> to vector<256x128xbf16>
    %cst_38 = arith.constant dense<0.000000e+00> : vector<16x128xf32>
    %36 = tpu.matmul %21, %35, %cst_38 {dimension_numbers = #tpu.dot_dimension_numbers<[1], [0], [0], [1], [0, 0, 1, 1], [], []>} : vector<16x256xbf16>, vector<256x128xbf16>, vector<16x128xf32> -> vector<16x128xf32>
    %c1 = arith.constant 1 : index
    %c0_39 = arith.constant 0 : index
    %37 = vector.load %arg1[%c1, %c0_39] : memref<4x256xf32, #tpu.memory_space<vmem>>, vector<1x128xf32>
    %38 = vector.broadcast %37 : vector<1x128xf32> to vector<16x128xf32>
    %39 = arith.addf %36, %38 : vector<16x128xf32>
    %cst_40 = arith.constant 0.000000e+00 : f32
    %40 = vector.broadcast %cst_40 : f32 to vector<16x128xf32>
    %41 = arith.maximumf %39, %40 : vector<16x128xf32>
    %42 = arith.truncf %41 : vector<16x128xf32> to vector<16x128xbf16>
    %c1_i32_41 = arith.constant 1 : i32
    %c1_i32_42 = arith.constant 1 : i32
    %c0_i32_43 = arith.constant 0 : i32
    %c0_i32_44 = arith.constant 0 : i32
    %c0_i32_45 = arith.constant 0 : i32
    %c0_i32_46 = arith.constant 0 : i32
    %43 = tpu.memref_slice %arg4[%c1_i32_41, %c1_i32_42, %c0_i32_45, %c0_i32_46] : memref<2x2x256x128xbf16, #tpu.memory_space<any>> -> memref<1x1x256x128xbf16, #tpu.memory_space<any>>
    %44 = tpu.memref_squeeze %43 : memref<1x1x256x128xbf16, #tpu.memory_space<any>> -> memref<256x128xbf16, #tpu.memory_space<any>>
    %c0_i32_47 = arith.constant 0 : i32
    %c0_i32_48 = arith.constant 0 : i32
    %45 = tpu.memref_slice %arg6[%c0_i32_43, %c0_i32_47, %c0_i32_48] : memref<3x256x128xbf16, #tpu.memory_space<vmem>> -> memref<1x256x128xbf16, #tpu.memory_space<vmem>>
    %46 = tpu.memref_squeeze %45 : memref<1x256x128xbf16, #tpu.memory_space<vmem>> -> memref<256x128xbf16, #tpu.memory_space<vmem>>
    %47 = tpu.memref_slice %arg7[%c0_i32_44] : memref<3x!tpu.dma_semaphore, #tpu.memory_space<semaphore_mem>> -> memref<1x!tpu.dma_semaphore, #tpu.memory_space<semaphore_mem>>
    %48 = tpu.memref_squeeze %47 : memref<1x!tpu.dma_semaphore, #tpu.memory_space<semaphore_mem>> -> memref<!tpu.dma_semaphore, #tpu.memory_space<semaphore_mem>>
    tpu.enqueue_dma source(%44 : memref<256x128xbf16, #tpu.memory_space<any>>) target(%46 : memref<256x128xbf16, #tpu.memory_space<vmem>>) target_semaphore(%48 : memref<!tpu.dma_semaphore, #tpu.memory_space<semaphore_mem>>)
    %c0_i32_49 = arith.constant 0 : i32
    %c1_i32_50 = arith.constant 1 : i32
    %c1_i32_51 = arith.constant 1 : i32
    %c1_i32_52 = arith.constant 1 : i32
    %c0_i32_53 = arith.constant 0 : i32
    %c0_i32_54 = arith.constant 0 : i32
    %49 = tpu.memref_slice %arg4[%c0_i32_49, %c1_i32_50, %c0_i32_53, %c0_i32_54] : memref<2x2x256x128xbf16, #tpu.memory_space<any>> -> memref<1x1x256x128xbf16, #tpu.memory_space<any>>
    %50 = tpu.memref_squeeze %49 : memref<1x1x256x128xbf16, #tpu.memory_space<any>> -> memref<256x128xbf16, #tpu.memory_space<any>>
    %c0_i32_55 = arith.constant 0 : i32
    %c0_i32_56 = arith.constant 0 : i32
    %51 = tpu.memref_slice %arg6[%c1_i32_51, %c0_i32_55, %c0_i32_56] : memref<3x256x128xbf16, #tpu.memory_space<vmem>> -> memref<1x256x128xbf16, #tpu.memory_space<vmem>>
    %52 = tpu.memref_squeeze %51 : memref<1x256x128xbf16, #tpu.memory_space<vmem>> -> memref<256x128xbf16, #tpu.memory_space<vmem>>
    %53 = tpu.memref_slice %arg7[%c1_i32_52] : memref<3x!tpu.dma_semaphore, #tpu.memory_space<semaphore_mem>> -> memref<1x!tpu.dma_semaphore, #tpu.memory_space<semaphore_mem>>
    %54 = tpu.memref_squeeze %53 : memref<1x!tpu.dma_semaphore, #tpu.memory_space<semaphore_mem>> -> memref<!tpu.dma_semaphore, #tpu.memory_space<semaphore_mem>>
    tpu.wait_dma2 semaphore(%54 : memref<!tpu.dma_semaphore, #tpu.memory_space<semaphore_mem>>) src(%50 : memref<256x128xbf16, #tpu.memory_space<any>>) dst(%52 : memref<256x128xbf16, #tpu.memory_space<vmem>>)
    %c1_57 = arith.constant 1 : index
    %c0_58 = arith.constant 0 : index
    %c0_59 = arith.constant 0 : index
    %55 = vector.load %arg6[%c1_57, %c0_58, %c0_59] : memref<3x256x128xbf16, #tpu.memory_space<vmem>>, vector<1x256x128xbf16>
    %56 = vector.shape_cast %55 : vector<1x256x128xbf16> to vector<256x128xbf16>
    %cst_60 = arith.constant dense<0.000000e+00> : vector<16x128xf32>
    %57 = tpu.matmul %21, %56, %cst_60 {dimension_numbers = #tpu.dot_dimension_numbers<[1], [0], [0], [1], [0, 0, 1, 1], [], []>} : vector<16x256xbf16>, vector<256x128xbf16>, vector<16x128xf32> -> vector<16x128xf32>
    %c1_61 = arith.constant 1 : index
    %c128 = arith.constant 128 : index
    %58 = vector.load %arg1[%c1_61, %c128] : memref<4x256xf32, #tpu.memory_space<vmem>>, vector<1x128xf32>
    %59 = vector.broadcast %58 : vector<1x128xf32> to vector<16x128xf32>
    %60 = arith.addf %57, %59 : vector<16x128xf32>
    %cst_62 = arith.constant 0.000000e+00 : f32
    %61 = vector.broadcast %cst_62 : f32 to vector<16x128xf32>
    %62 = arith.maximumf %60, %61 : vector<16x128xf32>
    %63 = arith.truncf %62 : vector<16x128xf32> to vector<16x128xbf16>
    %64 = tpu.concatenate %42, %63 in 1 : vector<16x128xbf16>, vector<16x128xbf16> -> vector<16x256xbf16>
    %c1_i32_63 = arith.constant 1 : i32
    %c0_i32_64 = arith.constant 0 : i32
    %c2_i32_65 = arith.constant 2 : i32
    %c2_i32_66 = arith.constant 2 : i32
    %c0_i32_67 = arith.constant 0 : i32
    %c0_i32_68 = arith.constant 0 : i32
    %65 = tpu.memref_slice %arg4[%c1_i32_63, %c0_i32_64, %c0_i32_67, %c0_i32_68] : memref<2x2x256x128xbf16, #tpu.memory_space<any>> -> memref<1x1x256x128xbf16, #tpu.memory_space<any>>
    %66 = tpu.memref_squeeze %65 : memref<1x1x256x128xbf16, #tpu.memory_space<any>> -> memref<256x128xbf16, #tpu.memory_space<any>>
    %c0_i32_69 = arith.constant 0 : i32
    %c0_i32_70 = arith.constant 0 : i32
    %67 = tpu.memref_slice %arg6[%c2_i32_65, %c0_i32_69, %c0_i32_70] : memref<3x256x128xbf16, #tpu.memory_space<vmem>> -> memref<1x256x128xbf16, #tpu.memory_space<vmem>>
    %68 = tpu.memref_squeeze %67 : memref<1x256x128xbf16, #tpu.memory_space<vmem>> -> memref<256x128xbf16, #tpu.memory_space<vmem>>
    %69 = tpu.memref_slice %arg7[%c2_i32_66] : memref<3x!tpu.dma_semaphore, #tpu.memory_space<semaphore_mem>> -> memref<1x!tpu.dma_semaphore, #tpu.memory_space<semaphore_mem>>
    %70 = tpu.memref_squeeze %69 : memref<1x!tpu.dma_semaphore, #tpu.memory_space<semaphore_mem>> -> memref<!tpu.dma_semaphore, #tpu.memory_space<semaphore_mem>>
    tpu.wait_dma2 semaphore(%70 : memref<!tpu.dma_semaphore, #tpu.memory_space<semaphore_mem>>) src(%66 : memref<256x128xbf16, #tpu.memory_space<any>>) dst(%68 : memref<256x128xbf16, #tpu.memory_space<vmem>>)
    %c2 = arith.constant 2 : index
    %c0_71 = arith.constant 0 : index
    %c0_72 = arith.constant 0 : index
    %71 = vector.load %arg6[%c2, %c0_71, %c0_72] : memref<3x256x128xbf16, #tpu.memory_space<vmem>>, vector<1x256x128xbf16>
    %72 = vector.shape_cast %71 : vector<1x256x128xbf16> to vector<256x128xbf16>
    %cst_73 = arith.constant dense<0.000000e+00> : vector<16x128xf32>
    %73 = tpu.matmul %64, %72, %cst_73 {dimension_numbers = #tpu.dot_dimension_numbers<[1], [0], [0], [1], [0, 0, 1, 1], [], []>} : vector<16x256xbf16>, vector<256x128xbf16>, vector<16x128xf32> -> vector<16x128xf32>
    %c2_74 = arith.constant 2 : index
    %c0_75 = arith.constant 0 : index
    %74 = vector.load %arg1[%c2_74, %c0_75] : memref<4x256xf32, #tpu.memory_space<vmem>>, vector<1x128xf32>
    %75 = vector.broadcast %74 : vector<1x128xf32> to vector<16x128xf32>
    %76 = arith.addf %73, %75 : vector<16x128xf32>
    %cst_76 = arith.constant 0.000000e+00 : f32
    %77 = vector.broadcast %cst_76 : f32 to vector<16x128xf32>
    %78 = arith.maximumf %76, %77 : vector<16x128xf32>
    %79 = arith.truncf %78 : vector<16x128xf32> to vector<16x128xbf16>
    %c1_i32_77 = arith.constant 1 : i32
    %c1_i32_78 = arith.constant 1 : i32
    %c0_i32_79 = arith.constant 0 : i32
    %c0_i32_80 = arith.constant 0 : i32
    %c0_i32_81 = arith.constant 0 : i32
    %c0_i32_82 = arith.constant 0 : i32
    %80 = tpu.memref_slice %arg4[%c1_i32_77, %c1_i32_78, %c0_i32_81, %c0_i32_82] : memref<2x2x256x128xbf16, #tpu.memory_space<any>> -> memref<1x1x256x128xbf16, #tpu.memory_space<any>>
    %81 = tpu.memref_squeeze %80 : memref<1x1x256x128xbf16, #tpu.memory_space<any>> -> memref<256x128xbf16, #tpu.memory_space<any>>
    %c0_i32_83 = arith.constant 0 : i32
    %c0_i32_84 = arith.constant 0 : i32
    %82 = tpu.memref_slice %arg6[%c0_i32_79, %c0_i32_83, %c0_i32_84] : memref<3x256x128xbf16, #tpu.memory_space<vmem>> -> memref<1x256x128xbf16, #tpu.memory_space<vmem>>
    %83 = tpu.memref_squeeze %82 : memref<1x256x128xbf16, #tpu.memory_space<vmem>> -> memref<256x128xbf16, #tpu.memory_space<vmem>>
    %84 = tpu.memref_slice %arg7[%c0_i32_80] : memref<3x!tpu.dma_semaphore, #tpu.memory_space<semaphore_mem>> -> memref<1x!tpu.dma_semaphore, #tpu.memory_space<semaphore_mem>>
    %85 = tpu.memref_squeeze %84 : memref<1x!tpu.dma_semaphore, #tpu.memory_space<semaphore_mem>> -> memref<!tpu.dma_semaphore, #tpu.memory_space<semaphore_mem>>
    tpu.wait_dma2 semaphore(%85 : memref<!tpu.dma_semaphore, #tpu.memory_space<semaphore_mem>>) src(%81 : memref<256x128xbf16, #tpu.memory_space<any>>) dst(%83 : memref<256x128xbf16, #tpu.memory_space<vmem>>)
    %c0_85 = arith.constant 0 : index
    %c0_86 = arith.constant 0 : index
    %c0_87 = arith.constant 0 : index
    %86 = vector.load %arg6[%c0_85, %c0_86, %c0_87] : memref<3x256x128xbf16, #tpu.memory_space<vmem>>, vector<1x256x128xbf16>
    %87 = vector.shape_cast %86 : vector<1x256x128xbf16> to vector<256x128xbf16>
    %cst_88 = arith.constant dense<0.000000e+00> : vector<16x128xf32>
    %88 = tpu.matmul %64, %87, %cst_88 {dimension_numbers = #tpu.dot_dimension_numbers<[1], [0], [0], [1], [0, 0, 1, 1], [], []>} : vector<16x256xbf16>, vector<256x128xbf16>, vector<16x128xf32> -> vector<16x128xf32>
    %c2_89 = arith.constant 2 : index
    %c128_90 = arith.constant 128 : index
    %89 = vector.load %arg1[%c2_89, %c128_90] : memref<4x256xf32, #tpu.memory_space<vmem>>, vector<1x128xf32>
    %90 = vector.broadcast %89 : vector<1x128xf32> to vector<16x128xf32>
    %91 = arith.addf %88, %90 : vector<16x128xf32>
    %cst_91 = arith.constant 0.000000e+00 : f32
    %92 = vector.broadcast %cst_91 : f32 to vector<16x128xf32>
    %93 = arith.maximumf %91, %92 : vector<16x128xf32>
    %94 = arith.truncf %93 : vector<16x128xf32> to vector<16x128xbf16>
    %95 = tpu.concatenate %79, %94 in 1 : vector<16x128xbf16>, vector<16x128xbf16> -> vector<16x256xbf16>
    %c0_92 = arith.constant 0 : index
    %c0_93 = arith.constant 0 : index
    %96 = vector.load %arg3[%c0_92, %c0_93] : memref<256x128xbf16, #tpu.memory_space<vmem>>, vector<256x128xbf16>
    %cst_94 = arith.constant dense<0.000000e+00> : vector<16x128xf32>
    %97 = tpu.matmul %95, %96, %cst_94 {dimension_numbers = #tpu.dot_dimension_numbers<[1], [0], [0], [1], [0, 0, 1, 1], [], []>} : vector<16x256xbf16>, vector<256x128xbf16>, vector<16x128xf32> -> vector<16x128xf32>
    %c3 = arith.constant 3 : index
    %c0_95 = arith.constant 0 : index
    %98 = vector.load %arg1[%c3, %c0_95] : memref<4x256xf32, #tpu.memory_space<vmem>>, vector<1x128xf32>
    %99 = vector.broadcast %98 : vector<1x128xf32> to vector<16x128xf32>
    %100 = arith.addf %97, %99 : vector<16x128xf32>
    %c0_96 = arith.constant 0 : index
    %c0_97 = arith.constant 0 : index
    %101 = vector.load %arg5[%c0_96, %c0_97] : memref<16x128xf32, #tpu.memory_space<vmem>>, vector<16x128xf32>
    tpu.vector_store %arg5[%c0_96, %c0_97], %100 {strides = array<i32>} : memref<16x128xf32, #tpu.memory_space<vmem>>, vector<16x128xf32>,
    return
  }
}

</mosaic_0001>

<bundles_post_ra>
// kernel: forward.1
= control target key start
LH: loop header
LB: loop body
LE: loop exit
PB: predicated region body
PF: predicated region fallthrough
CT: control target
= control target key end

     0   :  { %10 = vsyncpa [#allocation5], 0  ;;  %s1828_s0 = inlined_call_operand.vmem [shape: f32[16,512], index: 0, kind: input, shape index: {}]   ;;  %s1829_s1 = inlined_call_operand.vmem [shape: f32[4,256], index: 1, kind: input, shape index: {}]   ;;  %s1830_s2 = inlined_call_operand.hbm [shape: bf16[512,256], index: 2, kind: input, shape index: {}]   ;;  %s1831_s3 = inlined_call_operand.vmem [shape: bf16[256,128], index: 3, kind: input, shape index: {}]   ;;  %s1832_s4 = inlined_call_operand.hbm [shape: bf16[2,2,256,128], index: 4, kind: input, shape index: {}]   ;;  %s1833_s5 = inlined_call_operand.hbm [shape: f32[16,128], index: 5, kind: output, shape index: {}]  }
   0x1   :  { %11 = vsyncpa [#allocation6], 0  ;;  %s1546_s18 = smov [#allocation4]   ;;  %s1393_s22 = scalar_lea.hbm %s1830_s2, 8192 }
   0x2   :  { %s21_s19 = sshll.u32 %s1546_s18, 4  ;;  %p1394_p0 = scmp.ne.s32.totalorder %s1830_s2, %s1393_s22  ;;  %s22_s19 = int_to_ptr.vmem [resolvable:$true] %s21_s19 }
   0x3   :  { %p1397_p1 = scmp.lt.u32.totalorder %s1393_s22, %s1830_s2 }
   0x5   :  { %p1399_p2 = pnand %p1397_p1, %p1394_p0 }
   0x7   :  { %1402 = shalt.err (!%p1399_p2)
}
   0x8   :  { %s1403_s27 = scalar_lea.vmem %s22_s19, 8192  ;;  %p1408_p4 = scmp.lt.s32.totalorder %s22_s19, %s22_s19 }
   0x9   :  { %p1404_p3 = scmp.ne.s32.totalorder %s22_s19, %s1403_s27  ;;  %p1409_p5 = scmp.lt.s32.totalorder %s1403_s27, %s1403_s27 }
   0xb   :  { %p1410_p6 = por %p1409_p5, %p1408_p4 }
   0xd   :  { %p1411_p7 = pnand %p1410_p6, %p1404_p3 }
   0xf   :  { %1414 = shalt.err (!%p1411_p7)
}
  0x10   :  { %s1547_s28 = smov 128   ;;  %s1548_s29 = smov 8  }
  0x11   :  { %27 = dma.hbm_to_vmem [thread:$0]  %s1830_s2, 8192, %s22_s19, [#allocation5], %s1547_s28, %s1547_s28, %s1548_s29  }
  0x12   :  { %1534 = dma.done.wait [#allocation5], 8192  }
  0x13   :  { %1535 = vsyncadd [#allocation5], 4294959104  ;;  %v1281_v0 = vld [vmem:[#allocation4 + $0x4] ss:$8 sps:$4 sm:$0xff]   ;;  %v1283_v1 = vld [vmem:[#allocation4] ss:$8 sps:$4 sm:$0xff]  }
  0x14   :  { %467 = vmatprep.subr.bf16.mxu0 %v1281_v0  ;;  %v1284_v2 = vld [vmem:[#allocation4 + $0x14] ss:$8 sps:$4 sm:$0xff]   ;;  %v1286_v3 = vld [vmem:[#allocation4 + $0x10] ss:$8 sps:$4 sm:$0xff]   ;;  %v1287_v4 = vld [vmem:[#allocation4 + $0x24] ss:$8 sps:$4 sm:$0xff]  }
  0x15   :  { %468 = vmatpush1.bf16.msra.mxu0 %v1283_v1  ;;  %v1289_v5 = vld [vmem:[#allocation4 + $0x20] ss:$8 sps:$4 sm:$0xff]   ;;  %v1290_v6 = vld [vmem:[#allocation4 + $0x34] ss:$8 sps:$4 sm:$0xff]   ;;  %v1292_v7 = vld [vmem:[#allocation4 + $0x30] ss:$8 sps:$4 sm:$0xff]  }
  0x16   :  { %469 = vmatprep.subr.bf16.mxu0 %v1284_v2  ;;  %v1293_v8 = vld [vmem:[#allocation4 + $0x44] ss:$8 sps:$4 sm:$0xff]   ;;  %v1295_v9 = vld [vmem:[#allocation4 + $0x40] ss:$8 sps:$4 sm:$0xff]   ;;  %v1296_v10 = vld [vmem:[#allocation4 + $0x54] ss:$8 sps:$4 sm:$0xff]  }
  0x17   :  { %v1298_v11 = vld [vmem:[#allocation4 + $0x50] ss:$8 sps:$4 sm:$0xff]   ;;  %v1299_v12 = vld [vmem:[#allocation4 + $0x64] ss:$8 sps:$4 sm:$0xff]   ;;  %v1301_v16 = vld [vmem:[#allocation4 + $0x60] ss:$8 sps:$4 sm:$0xff]  }
  0x18   :  { %v60_v13 = vld [vmem:[%s1828_s0 + $0x8] sm:$0xff]  ;;  %v1302_v17 = vld [vmem:[#allocation4 + $0x74] ss:$8 sps:$4 sm:$0xff]   ;;  %v1304_v18 = vld [vmem:[#allocation4 + $0x70] ss:$8 sps:$4 sm:$0xff]   ;;  %s1549_s22 = smov [#allocation2]  }
  0x19   :  { %470 = vmatpush1.bf16.msra.mxu0 %v1286_v3  ;;  %v64_v14 = vld [vmem:[%s1828_s0 + $0x28] sm:$0xff]  ;;  %v1308_v21 = vld [vmem:[#allocation4 + $0x94] ss:$8 sps:$4 sm:$0xff]   ;;  %v1310_v22 = vld [vmem:[#allocation4 + $0x90] ss:$8 sps:$4 sm:$0xff]   ;;  %s41_s23 = sshll.u32 %s1549_s22, 4  ;;  %s1622_s23 = int_to_ptr.vmem [resolvable:$true] %s41_s23 }
  0x1a   :  { %471 = vmatprep.subr.bf16.mxu0 %v1287_v4  ;;  %v68_v15 = vpack.c.bf16 %v64_v14, %v60_v13  ;;  %v1305_v19 = vld [vmem:[#allocation4 + $0x84] ss:$8 sps:$4 sm:$0xff]   ;;  %v1307_v20 = vld [vmem:[#allocation4 + $0x80] ss:$8 sps:$4 sm:$0xff]   ;;  %v1314_v25 = vld [vmem:[#allocation4 + $0xb4] ss:$8 sps:$4 sm:$0xff]  }
  0x1b   :  { %v1311_v23 = vld [vmem:[#allocation4 + $0xa4] ss:$8 sps:$4 sm:$0xff]   ;;  %v1313_v24 = vld [vmem:[#allocation4 + $0xa0] ss:$8 sps:$4 sm:$0xff]   ;;  %v1316_v26 = vld [vmem:[#allocation4 + $0xb0] ss:$8 sps:$4 sm:$0xff]  }
  0x1c   :  { %499 = vmatprep.mubr.bf16.mxu0 %v68_v15  ;;  %v1317_v27 = vld [vmem:[#allocation4 + $0xc4] ss:$8 sps:$4 sm:$0xff]   ;;  %v1319_v28 = vld [vmem:[#allocation4 + $0xc0] ss:$8 sps:$4 sm:$0xff]   ;;  %v1320_v29 = vld [vmem:[#allocation4 + $0xd4] ss:$8 sps:$4 sm:$0xff]  }
  0x1d   :  { %472 = vmatpush1.bf16.msra.mxu0 %v1289_v5  ;;  %v1322_v30 = vld [vmem:[#allocation4 + $0xd0] ss:$8 sps:$4 sm:$0xff]   ;;  %v1323_v31 = vld [vmem:[#allocation4 + $0xe4] ss:$8 sps:$4 sm:$0xff]   ;;  %v1325_v32 = vld [vmem:[#allocation4 + $0xe0] ss:$8 sps:$4 sm:$0xff]  }
  0x1e   :  { %473 = vmatprep.subr.bf16.mxu0 %v1290_v6  ;;  %v1326_v33 = vld [vmem:[#allocation4 + $0xf4] ss:$8 sps:$4 sm:$0xff]   ;;  %v1328_v34 = vld [vmem:[#allocation4 + $0xf0] ss:$8 sps:$4 sm:$0xff]   ;;  %v59_v35 = vld [vmem:[%s1828_s0] sm:$0xff]  ;;  %s1550_s24 = smov [#allocation2 + $0x80]  }
  0x1f   :  { %v63_v36 = vld [vmem:[%s1828_s0 + $0x20] sm:$0xff]  ;;  %v62_v38 = vld [vmem:[%s1828_s0 + $0x18] sm:$0xff]  ;;  %s55_s25 = sshll.u32 %s1550_s24, 4  ;;  %s1627_s30 = scalar_lea.hbm %s1832_s4, 2048  ;;  %s56_s25 = int_to_ptr.vmem [resolvable:$true] %s55_s25 }
  0x20   :  { %v1331_v37 = vld [vmem:[#allocation4 + $0x104] ss:$8 sps:$4 sm:$0xff]   ;;  %v66_v39 = vld [vmem:[%s1828_s0 + $0x38] sm:$0xff]  ;;  %v67_v40 = vpack.c.bf16 %v63_v36, %v59_v35  ;;  %v1329_v41 = vld [vmem:[#allocation4 + $0x100] ss:$8 sps:$4 sm:$0xff]   ;;  %p1416_p8 = scmp.ne.s32.totalorder %s1832_s4, %s1627_s30  ;;  %s1636_s8 = scalar_lea.hbm %s1832_s4, 8192 }
  0x21   :  { %474 = vmatpush1.bf16.msra.mxu0 %v1292_v7  ;;  %v70_v42 = vpack.c.bf16 %v66_v39, %v62_v38  ;;  %v1334_v43 = vld [vmem:[#allocation4 + $0x114] ss:$8 sps:$4 sm:$0xff]   ;;  %v1332_v44 = vld [vmem:[#allocation4 + $0x110] ss:$8 sps:$4 sm:$0xff]   ;;  %v1337_v45 = vld [vmem:[#allocation4 + $0x124] ss:$8 sps:$4 sm:$0xff]   ;;  %p1418_p9 = scmp.lt.u32.totalorder %s1636_s8, %s1627_s30  ;;  %p1419_p10 = scmp.lt.u32.totalorder %s1627_s30, %s1832_s4 }
  0x22   :  { %475 = vmatprep.subr.bf16.mxu0 %v1293_v8  ;;  %v1335_v46 = vld [vmem:[#allocation4 + $0x120] ss:$8 sps:$4 sm:$0xff]   ;;  %v1340_v47 = vld [vmem:[#allocation4 + $0x134] ss:$8 sps:$4 sm:$0xff]   ;;  %v1338_v48 = vld [vmem:[#allocation4 + $0x130] ss:$8 sps:$4 sm:$0xff]  }
  0x23   :  { %v1343_v49 = vld [vmem:[#allocation4 + $0x144] ss:$8 sps:$4 sm:$0xff]   ;;  %v1341_v50 = vld [vmem:[#allocation4 + $0x140] ss:$8 sps:$4 sm:$0xff]   ;;  %v1346_v51 = vld [vmem:[#allocation4 + $0x154] ss:$8 sps:$4 sm:$0xff]   ;;  %p1420_p11 = por %p1419_p10, %p1418_p9 }
  0x24   :  { %v1344_v52 = vld [vmem:[#allocation4 + $0x150] ss:$8 sps:$4 sm:$0xff]   ;;  %v1349_v53 = vld [vmem:[#allocation4 + $0x164] ss:$8 sps:$4 sm:$0xff]   ;;  %v1347_v54 = vld [vmem:[#allocation4 + $0x160] ss:$8 sps:$4 sm:$0xff]  }
  0x25   :  { %476 = vmatpush1.bf16.msra.mxu0 %v1295_v9  ;;  %v1352_v55 = vld [vmem:[#allocation4 + $0x174] ss:$8 sps:$4 sm:$0xff]   ;;  %v1350_v56 = vld [vmem:[#allocation4 + $0x170] ss:$8 sps:$4 sm:$0xff]   ;;  %v1355_v57 = vld [vmem:[#allocation4 + $0x184] ss:$8 sps:$4 sm:$0xff]   ;;  %p1421_p12 = pnand %p1420_p11, %p1416_p8 }
  0x26   :  { %477 = vmatprep.subr.bf16.mxu0 %v1296_v10  ;;  %v1353_v58 = vld [vmem:[#allocation4 + $0x180] ss:$8 sps:$4 sm:$0xff]   ;;  %v1358_v59 = vld [vmem:[#allocation4 + $0x194] ss:$8 sps:$4 sm:$0xff]   ;;  %v1356_v60 = vld [vmem:[#allocation4 + $0x190] ss:$8 sps:$4 sm:$0xff]  }
  0x27   :  { %v1361_v61 = vld [vmem:[#allocation4 + $0x1a4] ss:$8 sps:$4 sm:$0xff]   ;;  %v1359_v62 = vld [vmem:[#allocation4 + $0x1a0] ss:$8 sps:$4 sm:$0xff]   ;;  %v1364_v63 = vld [vmem:[#allocation4 + $0x1b4] ss:$8 sps:$4 sm:$0xff]  }
  0x28   :  { %v1362_v0 = vld [vmem:[#allocation4 + $0x1b0] ss:$8 sps:$4 sm:$0xff]   ;;  %v1367_v1 = vld [vmem:[#allocation4 + $0x1c4] ss:$8 sps:$4 sm:$0xff]   ;;  %v1365_v2 = vld [vmem:[#allocation4 + $0x1c0] ss:$8 sps:$4 sm:$0xff]  }
  0x29   :  { %478 = vmatpush1.bf16.msra.mxu0 %v1298_v11  ;;  %v1370_v3 = vld [vmem:[#allocation4 + $0x1d4] ss:$8 sps:$4 sm:$0xff]   ;;  %v1368_v4 = vld [vmem:[#allocation4 + $0x1d0] ss:$8 sps:$4 sm:$0xff]   ;;  %v1373_v5 = vld [vmem:[#allocation4 + $0x1e4] ss:$8 sps:$4 sm:$0xff]  }
  0x2a   :  { %479 = vmatprep.subr.bf16.mxu0 %v1299_v12  ;;  %v1371_v6 = vld [vmem:[#allocation4 + $0x1e0] ss:$8 sps:$4 sm:$0xff]   ;;  %v1376_v7 = vld [vmem:[#allocation4 + $0x1f4] ss:$8 sps:$4 sm:$0xff]   ;;  %v1374_v8 = vld [vmem:[#allocation4 + $0x1f0] ss:$8 sps:$4 sm:$0xff]  }
  0x2b   :  { %v61_v9 = vld [vmem:[%s1828_s0 + $0x10] sm:$0xff] }
  0x2c   :  { %v65_v10 = vld [vmem:[%s1828_s0 + $0x30] sm:$0xff] }
  0x2d   :  { %480 = vmatpush1.bf16.msra.mxu0 %v1301_v16  ;;  %v69_v11 = vpack.c.bf16 %v65_v10, %v61_v9 }
  0x2e   :  { %481 = vmatprep.subr.bf16.mxu0 %v1302_v17 }
  0x31   :  { %482 = vmatpush1.bf16.msra.mxu0 %v1304_v18 }
  0x32   :  { %483 = vmatprep.subr.bf16.mxu0 %v1305_v19 }
  0x35   :  { %484 = vmatpush1.bf16.msra.mxu0 %v1307_v20 }
  0x36   :  { %485 = vmatprep.subr.bf16.mxu0 %v1308_v21 }
  0x39   :  { %486 = vmatpush1.bf16.msra.mxu0 %v1310_v22 }
  0x3a   :  { %487 = vmatprep.subr.bf16.mxu0 %v1311_v23 }
  0x3d   :  { %488 = vmatpush1.bf16.msra.mxu0 %v1313_v24 }
  0x3e   :  { %489 = vmatprep.subr.bf16.mxu0 %v1314_v25 }
  0x41   :  { %490 = vmatpush1.bf16.msra.mxu0 %v1316_v26 }
  0x42   :  { %491 = vmatprep.subr.bf16.mxu0 %v1317_v27 }
  0x45   :  { %492 = vmatpush1.bf16.msra.mxu0 %v1319_v28 }
  0x46   :  { %493 = vmatprep.subr.bf16.mxu0 %v1320_v29 }
  0x49   :  { %494 = vmatpush1.bf16.msra.mxu0 %v1322_v30 }
  0x4a   :  { %495 = vmatprep.subr.bf16.mxu0 %v1323_v31 }
  0x4d   :  { %496 = vmatpush1.bf16.msra.mxu0 %v1325_v32 }
  0x4e   :  { %497 = vmatprep.subr.bf16.mxu0 %v1326_v33 }
  0x51   :  { %498 = vmatpush1.bf16.msra.mxu0 %v1328_v34 }
  0x52   :  { %510 = vmatprep.subr.bf16.mxu0 %v1331_v37 }
  0x54   :  { %500 = vmatmul.mubr.bf16.vlgmr.msra.gmra.mrb[0].mxu0 %v67_v40 }
  0x55   :  { %511 = vmatpush1.bf16.msra.mxu0 %v1329_v41  ;;  %542 = vmatprep.mubr.bf16.mxu0 %v70_v42 }
  0x56   :  { %512 = vmatprep.subr.bf16.mxu0 %v1334_v43 }
  0x59   :  { %513 = vmatpush1.bf16.msra.mxu0 %v1332_v44 }
  0x5a   :  { %514 = vmatprep.subr.bf16.mxu0 %v1337_v45 }
  0x5d   :  { %515 = vmatpush1.bf16.msra.mxu0 %v1335_v46 }
  0x5e   :  { %516 = vmatprep.subr.bf16.mxu0 %v1340_v47 }
  0x61   :  { %517 = vmatpush1.bf16.msra.mxu0 %v1338_v48 }
  0x62   :  { %518 = vmatprep.subr.bf16.mxu0 %v1343_v49 }
  0x65   :  { %519 = vmatpush1.bf16.msra.mxu0 %v1341_v50 }
  0x66   :  { %520 = vmatprep.subr.bf16.mxu0 %v1346_v51 }
  0x69   :  { %521 = vmatpush1.bf16.msra.mxu0 %v1344_v52 }
  0x6a   :  { %522 = vmatprep.subr.bf16.mxu0 %v1349_v53 }
  0x6d   :  { %523 = vmatpush1.bf16.msra.mxu0 %v1347_v54 }
  0x6e   :  { %524 = vmatprep.subr.bf16.mxu0 %v1352_v55 }
  0x71   :  { %525 = vmatpush1.bf16.msra.mxu0 %v1350_v56 }
  0x72   :  { %526 = vmatprep.subr.bf16.mxu0 %v1355_v57 }
  0x75   :  { %527 = vmatpush1.bf16.msra.mxu0 %v1353_v58 }
  0x76   :  { %528 = vmatprep.subr.bf16.mxu0 %v1358_v59 }
  0x79   :  { %529 = vmatpush1.bf16.msra.mxu0 %v1356_v60 }
  0x7a   :  { %530 = vmatprep.subr.bf16.mxu0 %v1361_v61 }
  0x7d   :  { %531 = vmatpush1.bf16.msra.mxu0 %v1359_v62 }
  0x7e   :  { %532 = vmatprep.subr.bf16.mxu0 %v1364_v63 }
  0x81   :  { %533 = vmatpush1.bf16.msra.mxu0 %v1362_v0 }
  0x82   :  { %534 = vmatprep.subr.bf16.mxu0 %v1367_v1 }
  0x85   :  { %535 = vmatpush1.bf16.msra.mxu0 %v1365_v2 }
  0x86   :  { %536 = vmatprep.subr.bf16.mxu0 %v1370_v3 }
  0x89   :  { %537 = vmatpush1.bf16.msra.mxu0 %v1368_v4 }
  0x8a   :  { %538 = vmatprep.subr.bf16.mxu0 %v1373_v5 }
  0x8d   :  { %539 = vmatpush1.bf16.msra.mxu0 %v1371_v6 }
  0x8e   :  { %540 = vmatprep.subr.bf16.mxu0 %v1376_v7 }
  0x91   :  { %541 = vmatpush1.bf16.msra.mxu0 %v1374_v8 }
  0x94   :  { %543 = vmatmul.mubr.bf16.vlgmr.msra.gmra.mrb[0].mxu0 %v69_v11 }
  0x95   :  { %1424 = shalt.err (!%p1421_p12)  }
  0x96   :  { %s1425_s13 = scalar_lea.vmem %s1622_s23, 2048  ;;  %s1656_s15 = scalar_lea.vmem %s1622_s23, 6144 }
  0x97   :  { %p1651_p13 = scmp.ne.s32.totalorder %s1622_s23, %s1425_s13  ;;  %p1430_p0 = scmp.lt.s32.totalorder %s1622_s23, %s1622_s23 }
  0x98   :  { %p1431_p1 = scmp.lt.s32.totalorder %s1656_s15, %s1425_s13 }
  0x9a   :  { %p1661_p2 = por %p1431_p1, %p1430_p0 }
  0x9c   :  { %p1834_p3 = pnand %p1661_p2, %p1651_p13 }
  0x9e   :  { %1436 = shalt.err (!%p1834_p3)  }
  0x9f   :  { %44 = dma.hbm_to_vmem [thread:$0]  %s1832_s4, 2048, %s1622_s23, [#allocation3] }
  0xa0   :  { %s1681_s21 = scalar_lea.hbm %s1832_s4, 4096 }
  0xa1   :  { %p1438_p4 = scmp.ne.s32.totalorder %s1627_s30, %s1681_s21  ;;  %p1441_p5 = scmp.lt.u32.totalorder %s1636_s8, %s1681_s21 }
  0xa2   :  { %p1443_p7 = scmp.lt.u32.totalorder %s1681_s21, %s1627_s30 }
  0xa3   :  { %p1442_p6 = por %p1441_p5, %p1419_p10 }
  0xa5   :  { %p1444_p8 = por %p1443_p7, %p1442_p6 }
  0xa7   :  { %p1445_p9 = pnand %p1444_p8, %p1438_p4 }
  0xa9   :  { %1448 = shalt.err (!%p1445_p9)  }
  0xaa   :  { %s1449_s26 = scalar_lea.vmem %s56_s25, 2048  ;;  %p1454_p12 = scmp.lt.s32.totalorder %s56_s25, %s1622_s23 }
  0xab   :  { %p1450_p11 = scmp.ne.s32.totalorder %s56_s25, %s1449_s26  ;;  %p1455_p0 = scmp.lt.s32.totalorder %s1656_s15, %s1449_s26 }
  0xad   :  { %p1456_p1 = por %p1455_p0, %p1454_p12 }
  0xaf   :  { %p1457_p3 = pnand %p1456_p1, %p1450_p11 }
  0xb1   :  { %1460 = shalt.err (!%p1457_p3)  }
  0xb2   :  { %58 = dma.hbm_to_vmem [thread:$0]  %s1627_s30, 2048, %s56_s25, [#allocation3 + $0x1] }
  0xb3   :  { %s1551_s27 = smov [#allocation2 + $0x100]   ;;  %s1700_s7 = scalar_lea.hbm %s1832_s4, 6144 }
  0xb4   :  { %s569_s6 = sshll.u32 %s1551_s27, 4  ;;  %p1463_p10 = scmp.ne.s32.totalorder %s1681_s21, %s1700_s7  ;;  %s570_s6 = int_to_ptr.vmem [resolvable:$true] %s569_s6 }
  0xb5   :  { %p1465_p3 = scmp.lt.u32.totalorder %s1681_s21, %s1832_s4  ;;  %p1466_p4 = scmp.lt.u32.totalorder %s1636_s8, %s1700_s7 }
  0xb6   :  { %p1468_p6 = scmp.lt.u32.totalorder %s1700_s7, %s1681_s21 }
  0xb7   :  { %p1467_p5 = por %p1466_p4, %p1465_p3 }
  0xb9   :  { %p1469_p7 = por %p1468_p6, %p1467_p5 }
  0xbb   :  { %p1470_p8 = pnand %p1469_p7, %p1463_p10 }
  0xbd   :  { %1473 = shalt.err (!%p1470_p8)  }
  0xbe   :  { %s1474_s25 = scalar_lea.vmem %s570_s6, 2048  ;;  %p1479_p11 = scmp.lt.s32.totalorder %s570_s6, %s1622_s23 }
  0xbf   :  { %p1475_p9 = scmp.ne.s32.totalorder %s570_s6, %s1474_s25  ;;  %p1480_p12 = scmp.lt.s32.totalorder %s1656_s15, %s1474_s25 }
  0xc1   :  { %p1481_p0 = por %p1480_p12, %p1479_p11 }
  0xc3   :  { %p1482_p1 = pnand %p1481_p0, %p1475_p9 }
  0xc5   :  { %1485 = shalt.err (!%p1482_p1)  }
  0xc6   :  { %572 = dma.hbm_to_vmem [thread:$0]  %s1681_s21, 2048, %s570_s6, [#allocation3 + $0x2]  ;;  %v137_v12 = vlaneseq  ;;  %v135_v15 = vld [vmem:[%s1829_s1] ss:$4 sm:$0x3] }
  0xc8   :  { %v138_v13 = vshrl.u32 %v137_v12, 7 }
  0xca   :  { %v139_v14 = vsub.s32 0, %v138_v13  ;;  %v143_v16 = vsub.s32 1, %v138_v13 }
  0xcc   :  { %v140_v17 = vrot.slane %v135_v15, %v139_v14  ;;  %v144_v18 = vrot.slane %v135_v15, %v143_v16 }
 0x167   :  { %v544_v19 = vpop.f32.mrb[0].mxu0 }
 0x168   :  { %v1266_v20 = vadd.f32 %v544_v19, %v140_v17  ;;  %v546_v21 = vpop.f32.mrb[1].mxu0 }
 0x169   :  { %v1267_v22 = vadd.f32 %v546_v21, %v144_v18  ;;  %v548_v23 = vpop.f32.mrb[2].mxu0 }
 0x16a   :  { %v1268_v24 = vadd.f32 %v548_v23, %v140_v17  ;;  %v550_v25 = vpop.f32.mrb[3].mxu0  ;;  %v553_v27 = vmax.f32 %v1266_v20, 0.0 }
 0x16b   :  { %v1269_v26 = vadd.f32 %v550_v25, %v144_v18  ;;  %v554_v29 = vmax.f32 %v1267_v22, 0.0 }
 0x16c   :  { %v555_v28 = vmax.f32 %v1268_v24, 0.0 }
 0x16d   :  { %v556_v30 = vmax.f32 %v1269_v26, 0.0 }
 0x16e   :  { %v1721_v31 = vpack.c.bf16 %v555_v28, %v553_v27 }
 0x16f   :  { %v558_v32 = vpack.c.bf16 %v556_v30, %v554_v29 }
 0x170   :  { %1536 = dma.done.wait [#allocation3], 2048 }
 0x171   :  { %1537 = vsyncadd [#allocation3], 4294965248  ;;  %630 = vmatprep.mubr.bf16.mxu1 %v558_v32  ;;  %v585_v33 = vld [vmem:[#allocation2 + $0x40] sm:$0xff]  ;;  %v586_v35 = vld [vmem:[#allocation2 + $0x48] sm:$0xff]  ;;  %p1488_p10 = scmp.ne.s32.totalorder %s1700_s7, %s1636_s8  ;;  %p1490_p3 = scmp.lt.u32.totalorder %s1700_s7, %s1832_s4 }
 0x172   :  { %v577_v34 = vld [vmem:[#allocation2] sm:$0xff]  ;;  %1156 = vmatprep.subr.bf16.mxu1 %v585_v33  ;;  %v578_v36 = vld [vmem:[#allocation2 + $0x8] sm:$0xff]  ;;  %v587_v37 = vld [vmem:[#allocation2 + $0x50] sm:$0xff]  ;;  %p1491_p5 = scmp.lt.u32.totalorder %s1636_s8, %s1636_s8 }
 0x173   :  { %1157 = vmatpush3.bf16.msra.mxu1 %v577_v34  ;;  %v579_v38 = vld [vmem:[#allocation2 + $0x10] sm:$0xff]  ;;  %v588_v39 = vld [vmem:[#allocation2 + $0x58] sm:$0xff]  ;;  %v589_v41 = vld [vmem:[#allocation2 + $0x60] sm:$0xff] }
 0x174   :  { %1158 = vmatprep.subr.bf16.mxu1 %v586_v35  ;;  %v580_v40 = vld [vmem:[#allocation2 + $0x18] sm:$0xff]  ;;  %v581_v42 = vld [vmem:[#allocation2 + $0x20] sm:$0xff]  ;;  %v590_v43 = vld [vmem:[#allocation2 + $0x68] sm:$0xff]  ;;  %p1492_p6 = por %p1491_p5, %p1490_p3 }
 0x175   :  { %v582_v44 = vld [vmem:[#allocation2 + $0x28] sm:$0xff]  ;;  %v591_v45 = vld [vmem:[#allocation2 + $0x70] sm:$0xff]  ;;  %v592_v47 = vld [vmem:[#allocation2 + $0x78] sm:$0xff] }
 0x176   :  { %v583_v46 = vld [vmem:[#allocation2 + $0x30] sm:$0xff]  ;;  %v584_v48 = vld [vmem:[#allocation2 + $0x38] sm:$0xff]  ;;  %p1494_p7 = por %p1492_p6, %p1466_p4 }
 0x177   :  { %1159 = vmatpush3.bf16.msra.mxu1 %v578_v36 }
 0x178   :  { %1160 = vmatprep.subr.bf16.mxu1 %v587_v37  ;;  %p1495_p8 = pnand %p1494_p7, %p1488_p10 }
 0x17b   :  { %1161 = vmatpush3.bf16.msra.mxu1 %v579_v38 }
 0x17c   :  { %1162 = vmatprep.subr.bf16.mxu1 %v588_v39 }
 0x17f   :  { %1163 = vmatpush3.bf16.msra.mxu1 %v580_v40 }
 0x180   :  { %1164 = vmatprep.subr.bf16.mxu1 %v589_v41 }
 0x183   :  { %1165 = vmatpush3.bf16.msra.mxu1 %v581_v42 }
 0x184   :  { %1166 = vmatprep.subr.bf16.mxu1 %v590_v43 }
 0x187   :  { %1167 = vmatpush3.bf16.msra.mxu1 %v582_v44 }
 0x188   :  { %1168 = vmatprep.subr.bf16.mxu1 %v591_v45 }
 0x18b   :  { %1169 = vmatpush3.bf16.msra.mxu1 %v583_v46 }
 0x18c   :  { %1170 = vmatprep.subr.bf16.mxu1 %v592_v47 }
 0x18f   :  { %1171 = vmatpush3.bf16.msra.mxu1 %v584_v48 }
 0x192   :  { %631 = vmatmul.mubr.bf16.vlgmr.msra.gmra.mrb[0].mxu1 %v1721_v31 }
 0x193   :  { %1498 = shalt.err (!%p1495_p8)  }
 0x194   :  { %p1837_p9 = pnand %p1661_p2, %p1651_p13 }
 0x196   :  { %1510 = shalt.err (!%p1837_p9)  }
 0x197   :  { %653 = dma.hbm_to_vmem [thread:$0]  %s1700_s7, 2048, %s1622_s23, [#allocation3]  ;;  %v1132_v50 = vld [vmem:[%s1829_s1 + $0x1] ss:$0 sm:$0xff] }
 0x265   :  { %v1172_v49 = vpop.f32.mrb[0].mxu1 }
 0x266   :  { %v1173_v51 = vpop.f32.mrb[1].mxu1 }
 0x267   :  { %v1174_v52 = vadd.f32 %v1173_v51, %v1172_v49  ;;  %v1175_v53 = vpop.f32.mrb[2].mxu1 }
 0x268   :  { %v1176_v54 = vpop.f32.mrb[3].mxu1 }
 0x269   :  { %v633_v55 = vadd.f32 %v1174_v52, %v1132_v50  ;;  %v1177_v56 = vadd.f32 %v1176_v54, %v1175_v53 }
 0x26b   :  { %v636_v57 = vadd.f32 %v1177_v56, %v1132_v50  ;;  %v639_v58 = vmax.f32 %v633_v55, 0.0 }
 0x26d   :  { %v640_v59 = vmax.f32 %v636_v57, 0.0 }
 0x26f   :  { %v1745_v60 = vpack.c.bf16 %v640_v59, %v639_v58 }
 0x270   :  { %1538 = dma.done.wait [#allocation3 + $0x1], 2048 }
 0x271   :  { %1539 = vsyncadd [#allocation3 + $0x1], 4294965248  ;;  %709 = vmatprep.mubr.bf16.mxu1 %v558_v32  ;;  %v664_v61 = vld [vmem:[#allocation2 + $0xc0] sm:$0xff]  ;;  %v665_v63 = vld [vmem:[#allocation2 + $0xc8] sm:$0xff] }
 0x272   :  { %v656_v62 = vld [vmem:[#allocation2 + $0x80] sm:$0xff]  ;;  %1178 = vmatprep.subr.bf16.mxu1 %v664_v61  ;;  %v657_v0 = vld [vmem:[#allocation2 + $0x88] sm:$0xff]  ;;  %v666_v1 = vld [vmem:[#allocation2 + $0xd0] sm:$0xff] }
 0x273   :  { %1179 = vmatpush3.bf16.msra.mxu1 %v656_v62  ;;  %v658_v2 = vld [vmem:[#allocation2 + $0x90] sm:$0xff]  ;;  %v667_v3 = vld [vmem:[#allocation2 + $0xd8] sm:$0xff]  ;;  %v668_v5 = vld [vmem:[#allocation2 + $0xe0] sm:$0xff] }
 0x274   :  { %1180 = vmatprep.subr.bf16.mxu1 %v665_v63  ;;  %v659_v4 = vld [vmem:[#allocation2 + $0x98] sm:$0xff]  ;;  %v660_v6 = vld [vmem:[#allocation2 + $0xa0] sm:$0xff]  ;;  %v669_v7 = vld [vmem:[#allocation2 + $0xe8] sm:$0xff] }
 0x275   :  { %v661_v8 = vld [vmem:[#allocation2 + $0xa8] sm:$0xff]  ;;  %v670_v9 = vld [vmem:[#allocation2 + $0xf0] sm:$0xff]  ;;  %v671_v11 = vld [vmem:[#allocation2 + $0xf8] sm:$0xff] }
 0x276   :  { %v662_v10 = vld [vmem:[#allocation2 + $0xb0] sm:$0xff]  ;;  %v663_v12 = vld [vmem:[#allocation2 + $0xb8] sm:$0xff]  ;;  %v1133_v14 = vld [vmem:[%s1829_s1 + $0x5] ss:$0 sm:$0xff] }
 0x277   :  { %1181 = vmatpush3.bf16.msra.mxu1 %v657_v0 }
 0x278   :  { %1182 = vmatprep.subr.bf16.mxu1 %v666_v1 }
 0x27b   :  { %1183 = vmatpush3.bf16.msra.mxu1 %v658_v2 }
 0x27c   :  { %1184 = vmatprep.subr.bf16.mxu1 %v667_v3 }
 0x27f   :  { %1185 = vmatpush3.bf16.msra.mxu1 %v659_v4 }
 0x280   :  { %1186 = vmatprep.subr.bf16.mxu1 %v668_v5 }
 0x283   :  { %1187 = vmatpush3.bf16.msra.mxu1 %v660_v6 }
 0x284   :  { %1188 = vmatprep.subr.bf16.mxu1 %v669_v7 }
 0x287   :  { %1189 = vmatpush3.bf16.msra.mxu1 %v661_v8 }
 0x288   :  { %1190 = vmatprep.subr.bf16.mxu1 %v670_v9 }
 0x28b   :  { %1191 = vmatpush3.bf16.msra.mxu1 %v662_v10 }
 0x28c   :  { %1192 = vmatprep.subr.bf16.mxu1 %v671_v11 }
 0x28f   :  { %1193 = vmatpush3.bf16.msra.mxu1 %v663_v12 }
 0x292   :  { %710 = vmatmul.mubr.bf16.vlgmr.msra.gmra.mrb[4].mxu1 %v1721_v31 }
 0x365   :  { %v1194_v13 = vpop.f32.mrb[4].mxu1 }
 0x366   :  { %v1195_v15 = vpop.f32.mrb[5].mxu1 }
 0x367   :  { %v1196_v16 = vadd.f32 %v1195_v15, %v1194_v13  ;;  %v1197_v17 = vpop.f32.mrb[6].mxu1 }
 0x368   :  { %v1198_v18 = vpop.f32.mrb[7].mxu1 }
 0x369   :  { %v712_v19 = vadd.f32 %v1196_v16, %v1133_v14  ;;  %v1199_v20 = vadd.f32 %v1198_v18, %v1197_v17 }
 0x36b   :  { %v715_v21 = vadd.f32 %v1199_v20, %v1133_v14  ;;  %v718_v22 = vmax.f32 %v712_v19, 0.0 }
 0x36d   :  { %v719_v23 = vmax.f32 %v715_v21, 0.0 }
 0x36f   :  { %v720_v24 = vpack.c.bf16 %v719_v23, %v718_v22 }
 0x370   :  { %1540 = dma.done.wait [#allocation3 + $0x2], 2048 }
 0x371   :  { %1541 = vsyncadd [#allocation3 + $0x2], 4294965248  ;;  %776 = vmatprep.mubr.bf16.mxu1 %v720_v24  ;;  %v731_v25 = vld [vmem:[#allocation2 + $0x140] sm:$0xff]  ;;  %v732_v27 = vld [vmem:[#allocation2 + $0x148] sm:$0xff] }
 0x372   :  { %v723_v26 = vld [vmem:[#allocation2 + $0x100] sm:$0xff]  ;;  %1200 = vmatprep.subr.bf16.mxu1 %v731_v25  ;;  %v724_v28 = vld [vmem:[#allocation2 + $0x108] sm:$0xff]  ;;  %v733_v29 = vld [vmem:[#allocation2 + $0x150] sm:$0xff] }
 0x373   :  { %1201 = vmatpush3.bf16.msra.mxu1 %v723_v26  ;;  %v725_v30 = vld [vmem:[#allocation2 + $0x110] sm:$0xff]  ;;  %v734_v31 = vld [vmem:[#allocation2 + $0x158] sm:$0xff]  ;;  %v735_v33 = vld [vmem:[#allocation2 + $0x160] sm:$0xff] }
 0x374   :  { %1202 = vmatprep.subr.bf16.mxu1 %v732_v27  ;;  %v726_v32 = vld [vmem:[#allocation2 + $0x118] sm:$0xff]  ;;  %v727_v34 = vld [vmem:[#allocation2 + $0x120] sm:$0xff]  ;;  %v736_v35 = vld [vmem:[#allocation2 + $0x168] sm:$0xff] }
 0x375   :  { %v728_v36 = vld [vmem:[#allocation2 + $0x128] sm:$0xff]  ;;  %v737_v37 = vld [vmem:[#allocation2 + $0x170] sm:$0xff]  ;;  %v738_v39 = vld [vmem:[#allocation2 + $0x178] sm:$0xff] }
 0x376   :  { %v729_v38 = vld [vmem:[#allocation2 + $0x130] sm:$0xff]  ;;  %v730_v40 = vld [vmem:[#allocation2 + $0x138] sm:$0xff]  ;;  %v1134_v42 = vld [vmem:[%s1829_s1 + $0x2] ss:$0 sm:$0xff] }
 0x377   :  { %1203 = vmatpush3.bf16.msra.mxu1 %v724_v28 }
 0x378   :  { %1204 = vmatprep.subr.bf16.mxu1 %v733_v29 }
 0x37b   :  { %1205 = vmatpush3.bf16.msra.mxu1 %v725_v30 }
 0x37c   :  { %1206 = vmatprep.subr.bf16.mxu1 %v734_v31 }
 0x37f   :  { %1207 = vmatpush3.bf16.msra.mxu1 %v726_v32 }
 0x380   :  { %1208 = vmatprep.subr.bf16.mxu1 %v735_v33 }
 0x383   :  { %1209 = vmatpush3.bf16.msra.mxu1 %v727_v34 }
 0x384   :  { %1210 = vmatprep.subr.bf16.mxu1 %v736_v35 }
 0x387   :  { %1211 = vmatpush3.bf16.msra.mxu1 %v728_v36 }
 0x388   :  { %1212 = vmatprep.subr.bf16.mxu1 %v737_v37 }
 0x38b   :  { %1213 = vmatpush3.bf16.msra.mxu1 %v729_v38 }
 0x38c   :  { %1214 = vmatprep.subr.bf16.mxu1 %v738_v39 }
 0x38f   :  { %1215 = vmatpush3.bf16.msra.mxu1 %v730_v40 }
 0x392   :  { %777 = vmatmul.mubr.bf16.vlgmr.msra.gmra.mrb[8].mxu1 %v1745_v60 }
 0x465   :  { %v1216_v41 = vpop.f32.mrb[8].mxu1 }
 0x466   :  { %v1217_v43 = vpop.f32.mrb[9].mxu1 }
 0x467   :  { %v1218_v44 = vadd.f32 %v1217_v43, %v1216_v41  ;;  %v1219_v45 = vpop.f32.mrb[10].mxu1 }
 0x468   :  { %v1220_v46 = vpop.f32.mrb[11].mxu1 }
 0x469   :  { %v779_v47 = vadd.f32 %v1218_v44, %v1134_v42  ;;  %v1221_v48 = vadd.f32 %v1220_v46, %v1219_v45 }
 0x46b   :  { %v782_v49 = vadd.f32 %v1221_v48, %v1134_v42  ;;  %v785_v50 = vmax.f32 %v779_v47, 0.0 }
 0x46d   :  { %v786_v51 = vmax.f32 %v782_v49, 0.0 }
 0x46f   :  { %v1755_v52 = vpack.c.bf16 %v786_v51, %v785_v50 }
 0x470   :  { %1542 = dma.done.wait [#allocation3], 2048 }
 0x471   :  { %1543 = vsyncadd [#allocation3], 4294965248  ;;  %843 = vmatprep.mubr.bf16.mxu1 %v720_v24  ;;  %v798_v53 = vld [vmem:[#allocation2 + $0x40] sm:$0xff]  ;;  %v799_v55 = vld [vmem:[#allocation2 + $0x48] sm:$0xff]  ;;  %s1552_s6 = smov [#allocation7]  }
 0x472   :  { %v790_v54 = vld [vmem:[#allocation2] sm:$0xff]  ;;  %1222 = vmatprep.subr.bf16.mxu1 %v798_v53  ;;  %v791_v56 = vld [vmem:[#allocation2 + $0x8] sm:$0xff]  ;;  %v800_v57 = vld [vmem:[#allocation2 + $0x50] sm:$0xff]  ;;  %s1036_s2 = sshll.u32 %s1552_s6, 4  ;;  %s1037_s2 = int_to_ptr.vmem [resolvable:$true] %s1036_s2 }
 0x473   :  { %1223 = vmatpush3.bf16.msra.mxu1 %v790_v54  ;;  %v792_v58 = vld [vmem:[#allocation2 + $0x10] sm:$0xff]  ;;  %v801_v59 = vld [vmem:[#allocation2 + $0x58] sm:$0xff]  ;;  %v1377_v61 = vld [vmem:[%s1831_s3 + $0x40] sm:$0xff]   ;;  %s1512_s0 = scalar_lea.vmem %s1037_s2, 256  ;;  %p1517_p2 = scmp.lt.s32.totalorder %s1037_s2, %s1037_s2 }
 0x474   :  { %1224 = vmatprep.subr.bf16.mxu1 %v799_v55  ;;  %v1378_v62 = vld [vmem:[%s1831_s3] sm:$0xff]   ;;  %1244 = vmatprep.subr.bf16.mxu0 %v1377_v61  ;;  %v1379_v63 = vld [vmem:[%s1831_s3 + $0x48] sm:$0xff]   ;;  %v1381_v1 = vld [vmem:[%s1831_s3 + $0x50] sm:$0xff]   ;;  %p1513_p13 = scmp.ne.s32.totalorder %s1037_s2, %s1512_s0  ;;  %p1518_p4 = scmp.lt.s32.totalorder %s1512_s0, %s1512_s0 }
 0x475   :  { %1245 = vmatpush3.bf16.msra.mxu0 %v1378_v62  ;;  %v1380_v0 = vld [vmem:[%s1831_s3 + $0x8] sm:$0xff]   ;;  %v793_v2 = vld [vmem:[#allocation2 + $0x18] sm:$0xff]  ;;  %v802_v3 = vld [vmem:[#allocation2 + $0x60] sm:$0xff] }
 0x476   :  { %1246 = vmatprep.subr.bf16.mxu0 %v1379_v63  ;;  %v794_v4 = vld [vmem:[#allocation2 + $0x20] sm:$0xff]  ;;  %v1382_v5 = vld [vmem:[%s1831_s3 + $0x10] sm:$0xff]   ;;  %v803_v6 = vld [vmem:[#allocation2 + $0x68] sm:$0xff]  ;;  %p1519_p11 = por %p1518_p4, %p1517_p2 }
 0x477   :  { %1225 = vmatpush3.bf16.msra.mxu1 %v791_v56  ;;  %v1383_v7 = vld [vmem:[%s1831_s3 + $0x58] sm:$0xff]   ;;  %v1385_v9 = vld [vmem:[%s1831_s3 + $0x60] sm:$0xff]   ;;  %v795_v10 = vld [vmem:[#allocation2 + $0x28] sm:$0xff] }
 0x478   :  { %1226 = vmatprep.subr.bf16.mxu1 %v800_v57  ;;  %v1384_v8 = vld [vmem:[%s1831_s3 + $0x18] sm:$0xff]   ;;  %v804_v11 = vld [vmem:[#allocation2 + $0x70] sm:$0xff]  ;;  %v1386_v12 = vld [vmem:[%s1831_s3 + $0x20] sm:$0xff]   ;;  %p1520_p12 = pnand %p1519_p11, %p1513_p13 }
 0x479   :  { %1247 = vmatpush3.bf16.msra.mxu0 %v1380_v0  ;;  %v796_v13 = vld [vmem:[#allocation2 + $0x30] sm:$0xff]  ;;  %v805_v14 = vld [vmem:[#allocation2 + $0x78] sm:$0xff]  ;;  %v1387_v16 = vld [vmem:[%s1831_s3 + $0x68] sm:$0xff]  }
 0x47a   :  { %1248 = vmatprep.subr.bf16.mxu0 %v1381_v1  ;;  %v797_v15 = vld [vmem:[#allocation2 + $0x38] sm:$0xff]  ;;  %v1388_v17 = vld [vmem:[%s1831_s3 + $0x28] sm:$0xff]   ;;  %v1389_v18 = vld [vmem:[%s1831_s3 + $0x70] sm:$0xff]  }
 0x47b   :  { %1227 = vmatpush3.bf16.msra.mxu1 %v792_v58  ;;  %v1390_v19 = vld [vmem:[%s1831_s3 + $0x30] sm:$0xff]   ;;  %v1392_v20 = vld [vmem:[%s1831_s3 + $0x38] sm:$0xff]   ;;  %v1135_v23 = vld [vmem:[%s1829_s1 + $0x6] ss:$0 sm:$0xff] }
 0x47c   :  { %1228 = vmatprep.subr.bf16.mxu1 %v801_v59  ;;  %v1136_v34 = vld [vmem:[%s1829_s1 + $0x3] ss:$0 sm:$0xff] }
 0x47d   :  { %1249 = vmatpush3.bf16.msra.mxu0 %v1382_v5 }
 0x47e   :  { %1250 = vmatprep.subr.bf16.mxu0 %v1383_v7 }
 0x47f   :  { %1229 = vmatpush3.bf16.msra.mxu1 %v793_v2 }
 0x480   :  { %1230 = vmatprep.subr.bf16.mxu1 %v802_v3 }
 0x481   :  { %1251 = vmatpush3.bf16.msra.mxu0 %v1384_v8 }
 0x482   :  { %1252 = vmatprep.subr.bf16.mxu0 %v1385_v9 }
 0x483   :  { %1231 = vmatpush3.bf16.msra.mxu1 %v794_v4 }
 0x484   :  { %1232 = vmatprep.subr.bf16.mxu1 %v803_v6 }
 0x485   :  { %1253 = vmatpush3.bf16.msra.mxu0 %v1386_v12 }
 0x486   :  { %1254 = vmatprep.subr.bf16.mxu0 %v1387_v16 }
 0x487   :  { %1233 = vmatpush3.bf16.msra.mxu1 %v795_v10 }
 0x488   :  { %1234 = vmatprep.subr.bf16.mxu1 %v804_v11 }
 0x489   :  { %1255 = vmatpush3.bf16.msra.mxu0 %v1388_v17 }
 0x48a   :  { %1256 = vmatprep.subr.bf16.mxu0 %v1389_v18 }
 0x48b   :  { %1235 = vmatpush3.bf16.msra.mxu1 %v796_v13 }
 0x48c   :  { %1236 = vmatprep.subr.bf16.mxu1 %v805_v14 }
 0x48d   :  { %1257 = vmatpush3.bf16.msra.mxu0 %v1390_v19 }
 0x48f   :  { %1237 = vmatpush3.bf16.msra.mxu1 %v797_v15 }
 0x492   :  { %844 = vmatmul.mubr.bf16.vlgmr.msra.gmra.mrb[12].mxu1 %v1745_v60  ;;  %v1391_v60 = vld [vmem:[%s1831_s3 + $0x78] sm:$0xff]  }
 0x493   :  { %1258 = vmatprep.subr.bf16.mxu0 %v1391_v60 }
 0x494   :  { %1259 = vmatpush3.bf16.msra.mxu0 %v1392_v20 }
 0x565   :  { %v1238_v21 = vpop.f32.mrb[12].mxu1 }
 0x566   :  { %v1239_v22 = vpop.f32.mrb[13].mxu1 }
 0x567   :  { %v1240_v24 = vadd.f32 %v1239_v22, %v1238_v21  ;;  %v1241_v25 = vpop.f32.mrb[14].mxu1 }
 0x568   :  { %v1242_v26 = vpop.f32.mrb[15].mxu1 }
 0x569   :  { %v1243_v27 = vadd.f32 %v1242_v26, %v1241_v25  ;;  %v846_v28 = vadd.f32 %v1240_v24, %v1135_v23 }
 0x56b   :  { %v849_v29 = vadd.f32 %v1243_v27, %v1135_v23  ;;  %v852_v30 = vmax.f32 %v846_v28, 0.0 }
 0x56d   :  { %v853_v31 = vmax.f32 %v849_v29, 0.0 }
 0x56f   :  { %v854_v32 = vpack.c.bf16 %v853_v31, %v852_v30 }
 0x571   :  { %1020 = vmatprep.mubr.bf16.mxu0 %v854_v32 }
 0x572   :  { %1021 = vmatmul.mubr.bf16.vlgmr.msra.gmra.mrb[4].mxu0 %v1755_v52 }
 0x645   :  { %v1260_v33 = vpop.f32.mrb[4].mxu0 }
 0x646   :  { %v1261_v35 = vpop.f32.mrb[5].mxu0 }
 0x647   :  { %v1262_v36 = vadd.f32 %v1261_v35, %v1260_v33  ;;  %v1263_v37 = vpop.f32.mrb[6].mxu0 }
 0x648   :  { %v1264_v38 = vpop.f32.mrb[7].mxu0 }
 0x649   :  { %v1023_v39 = vadd.f32 %v1262_v36, %v1136_v34  ;;  %v1265_v40 = vadd.f32 %v1264_v38, %v1263_v37 }
 0x64b   :  { %1029 = vst [vmem:[#allocation7] sm:$0xff] %v1023_v39  ;;  %v1026_v41 = vadd.f32 %v1265_v40, %v1136_v34 }
 0x64d   :  { %1030 = vst [vmem:[#allocation7 + $0x8] sm:$0xff] %v1026_v41 }
 0x64e   :  { %1523 = shalt.err (!%p1520_p12)
}
 0x64f   :  { %s1524_s9 = scalar_lea.hbm %s1833_s5, 256 }
 0x650   :  { %p1525_p0 = scmp.ne.s32.totalorder %s1833_s5, %s1524_s9  ;;  %p1528_p1 = scmp.lt.u32.totalorder %s1524_s9, %s1833_s5 }
 0x652   :  { %p1530_p10 = pnand %p1528_p1, %p1525_p0 }
 0x654   :  { %1533 = shalt.err (!%p1530_p10)
}
 0x655   :  { %1042 = dma.vmem_to_hbm [thread:$0]  %s1037_s2, 256, %s1833_s5, [#allocation6], %s1547_s28, %s1547_s28, %s1548_s29  }
 0x656   :  { %1544 = dma.done.wait [#allocation6], 256  }
 0x657   :  { %1545 = vsyncadd [#allocation6], 4294967040 }
 0x658   :  { %1046 = vsyncpa [#allocation5], 1 }
 0x659   :  { %1047 = vsyncpa [#allocation6], 1 }
 0x65a   :  { %1048 = vsyncmov [#allocation3] }
 0x65d   :  { %s1049_s15 = vpop.sfrf %1048 }
 0x65e   :  { %p1153_p3 = scmp.ne.s32.totalorder %s1049_s15, 0 }
 0x660   :  { %1053 = shalt.err (%p1153_p3)  }
 0x661   :  { %1055 = vsyncmov [#allocation3 + $0x1] }
 0x664   :  { %s1056_s17 = vpop.sfrf %1055 }
 0x665   :  { %p1154_p5 = scmp.ne.s32.totalorder %s1056_s17, 0 }
 0x667   :  { %1060 = shalt.err (%p1154_p5)  }
 0x668   :  { %1062 = vsyncmov [#allocation3 + $0x2] }
 0x66b   :  { %s1063_s4 = vpop.sfrf %1062 }
 0x66c   :  { %p1155_p6 = scmp.ne.s32.totalorder %s1063_s4, 0 }
 0x66e   :  { %1067 = shalt.err (%p1155_p6)  }

</bundles_post_ra>
